<compile_context>
chip_gen: v6e
topology: v6e:2x2x1
jax: 0.10.0
libtpu: 0.0.40
codegen_flags: <defaults>
</compile_context>

<pallas_src>
import numpy as np
import jax
import jax.numpy as jnp
from jax import lax
from jax.experimental import pallas as pl
from jax.experimental.pallas import tpu as pltpu

_SQRT_2_OVER_PI = 0.7978845608028654
_GELU_C = 0.044715 * _SQRT_2_OVER_PI   # folded constant


def _build_su_matrix(H, W, stride, pad, scale):
    """Constant 0/1 matrix SU of shape (H*W + 1, Hu*Wu).

    Column c (flattened upsampled NCHW spatial position) has a single 1:
      * at row ih*W+iw if the conv output position it replicates samples real
        input pixel (ih, iw),
      * at the extra row H*W if that conv position samples only zero padding
        (the kernel routes gelu(bias) there via the bias-only column of X_ext).
    This folds S (pad + stride-2 1x1-conv gather) @ U (4x nearest upsample).
    """
    Ho = (H + 2 * pad - 1) // stride + 1
    Wo = (W + 2 * pad - 1) // stride + 1
    Hu, Wu = Ho * scale, Wo * scale
    P = H * W
    SU = np.zeros((P + 1, Hu * Wu), dtype=np.float32)
    for hu in range(Hu):
        ih = (hu // scale) * stride - pad
        for wu in range(Wu):
            iw = (wu // scale) * stride - pad
            c = hu * Wu + wu
            if 0 <= ih < H and 0 <= iw < W:
                SU[ih * W + iw, c] = 1.0
            else:
                SU[P, c] = 1.0
    return SU, Hu, Wu


def _fused_kernel(w_ref, x_ref, su_ref, o_ref):
    # w_ref: (Cout, Cin+1)  x_ref: (Cin+1, P+1)  su_ref: (P+1, Pu)  o_ref: (Cout, Pu)
    y = jnp.dot(w_ref[...], x_ref[...],
                preferred_element_type=jnp.float32,
                precision=lax.Precision.DEFAULT)           # conv + bias, (Cout, P+1)
    # (0.5*y) * (1 + tanh(0.79788456*(y + 0.044715*y^3))), constants folded.
    arg = y * (y * y * _GELU_C + _SQRT_2_OVER_PI)
    z = (y * 0.5) * (jnp.tanh(arg) + 1.0)
    # pad/stride gather + 4x nearest upsample + NCHW spatial flatten, one matmul.
    o_ref[...] = jnp.dot(z, su_ref[...],
                         preferred_element_type=jnp.float32,
                         precision=lax.Precision.DEFAULT)


@jax.jit
def model_forward(x, weight, bias):
    """x: (1, Cin, H, W) f32; weight: (Cout, Cin, 1, 1) f32; bias: (Cout,) f32."""
    N, Cin, H, W = x.shape
    Cout = weight.shape[0]
    assert N == 1
    P = H * W

    SU_np, Hu, Wu = _build_su_matrix(H, W, stride=2, pad=1, scale=4)

    x2d = x.reshape(Cin, P)                                   # free metadata reshape
    # X_ext: rows 0..Cin-1 = x (with an all-zero extra column -> bias-only output),
    #        row Cin       = ones (bias channel).  Shape (Cin+1, P+1).
    x_ext = jnp.concatenate(
        [jnp.concatenate([x2d, jnp.zeros((Cin, 1), jnp.float32)], axis=1),
         jnp.ones((1, P + 1), jnp.float32)],
        axis=0)
    # W_ext = [W | b], shape (Cout, Cin+1): bias folded into the GEMM.
    w_ext = jnp.concatenate(
        [weight.reshape(Cout, Cin), bias.reshape(Cout, 1)], axis=1)

    out = pl.pallas_call(
        _fused_kernel,
        out_shape=jax.ShapeDtypeStruct((Cout, Hu * Wu), jnp.float32),
        in_specs=[pl.BlockSpec(memory_space=pltpu.MemorySpace.VMEM)] * 3,
        out_specs=pl.BlockSpec(memory_space=pltpu.MemorySpace.VMEM),
    )(w_ext, x_ext, jnp.asarray(SU_np))

    return out.reshape(N, Cout, Hu, Wu)        # free metadata reshape -> final NCHW


def _reference_forward(x, weight, bias):
    """Pure-JAX reference mirroring the module order (conv -> upsample -> gelu)."""
    N, Cin, H, W = x.shape
    Cout = weight.shape[0]
    xs = jnp.pad(x, ((0, 0), (0, 0), (1, 1), (1, 1)))[:, :, ::2, ::2]
    Ho, Wo = xs.shape[2], xs.shape[3]
    y = weight.reshape(Cout, Cin) @ xs.reshape(Cin, Ho * Wo) + bias[:, None]
    y = y.reshape(1, Cout, Ho, Wo)
    y = jnp.repeat(jnp.repeat(y, 4, axis=2), 4, axis=3)
    return (0.5 * y) * (1.0 + jnp.tanh(
        _SQRT_2_OVER_PI * (y + 0.044715 * y * y * y)))


if __name__ == "__main__":
    key = jax.random.PRNGKey(0)
    k_x, k_w, k_b = jax.random.split(key, 3)

    # Shapes implied by the module: x1 = randn(1,128,4,5), Conv2d(128, 64, 1, stride=2, padding=1)
    x1 = jax.random.normal(k_x, (1, 128, 4, 5), dtype=jnp.float32)
    Cin, Cout = 128, 64
    bound = 1.0 / (Cin ** 0.5)   # Conv2d default init range
    weight = jax.random.uniform(k_w, (Cout, Cin, 1, 1), jnp.float32, -bound, bound)
    bias = jax.random.uniform(k_b, (Cout,), jnp.float32, -bound, bound)

    out = model_forward(x1, weight, bias)
    jax.block_until_ready(out)
    assert out.shape == (1, 64, 12, 16), out.shape

    ref = _reference_forward(x1, weight, bias)
    max_err = float(jnp.max(jnp.abs(out - ref)))
    assert max_err < 5e-2, f"mismatch vs reference: max abs err {max_err}"
    print("KERNEL_OK")
</pallas_src>

<mosaic_0001>
module attributes {stable_mosaic.version = 11 : i64} {
  func.func @_fused_kernel(%arg0: memref<64x129xf32, #tpu.memory_space<vmem>>, %arg1: memref<129x21xf32, #tpu.memory_space<vmem>>, %arg2: memref<21x192xf32, #tpu.memory_space<vmem>>, %arg3: memref<64x192xf32, #tpu.memory_space<vmem>>) attributes {dimension_semantics = [], scalar_prefetch = 0 : i64, scratch_operands = 0 : i64, tpu.core_type = #tpu.core_type<tc>} {
    %c0 = arith.constant 0 : index
    %c0_0 = arith.constant 0 : index
    %0 = vector.load %arg0[%c0, %c0_0] : memref<64x129xf32, #tpu.memory_space<vmem>>, vector<64x129xf32>
    %c0_1 = arith.constant 0 : index
    %c0_2 = arith.constant 0 : index
    %1 = vector.load %arg1[%c0_1, %c0_2] : memref<129x21xf32, #tpu.memory_space<vmem>>, vector<129x21xf32>
    %cst = arith.constant dense<0.000000e+00> : vector<64x21xf32>
    %2 = tpu.matmul %0, %1, %cst {dimension_numbers = #tpu.dot_dimension_numbers<[1], [0], [0], [1], [0, 0, 1, 1], [], []>} : vector<64x129xf32>, vector<129x21xf32>, vector<64x21xf32> -> vector<64x21xf32>
    %3 = arith.mulf %2, %2 : vector<64x21xf32>
    %cst_3 = arith.constant 0.0356774069 : f32
    %4 = vector.broadcast %cst_3 : f32 to vector<64x21xf32>
    %5 = arith.mulf %3, %4 : vector<64x21xf32>
    %cst_4 = arith.constant 0.797884583 : f32
    %6 = vector.broadcast %cst_4 : f32 to vector<64x21xf32>
    %7 = arith.addf %5, %6 : vector<64x21xf32>
    %8 = arith.mulf %2, %7 : vector<64x21xf32>
    %cst_5 = arith.constant 5.000000e-01 : f32
    %9 = vector.broadcast %cst_5 : f32 to vector<64x21xf32>
    %10 = arith.mulf %2, %9 : vector<64x21xf32>
    %11 = math.tanh %8 : vector<64x21xf32>
    %cst_6 = arith.constant 1.000000e+00 : f32
    %12 = vector.broadcast %cst_6 : f32 to vector<64x21xf32>
    %13 = arith.addf %11, %12 : vector<64x21xf32>
    %14 = arith.mulf %10, %13 : vector<64x21xf32>
    %c0_7 = arith.constant 0 : index
    %c0_8 = arith.constant 0 : index
    %15 = vector.load %arg2[%c0_7, %c0_8] : memref<21x192xf32, #tpu.memory_space<vmem>>, vector<21x192xf32>
    %cst_9 = arith.constant dense<0.000000e+00> : vector<64x192xf32>
    %16 = tpu.matmul %14, %15, %cst_9 {dimension_numbers = #tpu.dot_dimension_numbers<[1], [0], [0], [1], [0, 0, 1, 1], [], []>} : vector<64x21xf32>, vector<21x192xf32>, vector<64x192xf32> -> vector<64x192xf32>
    %c0_10 = arith.constant 0 : index
    %c0_11 = arith.constant 0 : index
    %17 = vector.load %arg3[%c0_10, %c0_11] : memref<64x192xf32, #tpu.memory_space<vmem>>, vector<64x192xf32>
    tpu.vector_store %arg3[%c0_10, %c0_11], %16 {strides = array<i32>} : memref<64x192xf32, #tpu.memory_space<vmem>>, vector<64x192xf32>,
    return
  }
}

</mosaic_0001>

<bundles_post_ra>
// kernel: model_forward.1
= control target key start
LH: loop header
LB: loop body
LE: loop exit
PB: predicated region body
PF: predicated region fallthrough
CT: control target
= control target key end

     0   :  { %v453_v0 = vmov 0.0   ;;  %vm47_vm0 = vcmask 7168   ;;  %vm72_vm1 = vcmask 1040384   ;;  %vm276_vm2 = vcmask 1044480   ;;  %s688_s1 = inlined_call_operand.vmem [shape: f32[129,21], index: 1, kind: input, shape index: {}]   ;;  %s689_s0 = inlined_call_operand.vmem [shape: f32[64,129], index: 0, kind: input, shape index: {}]   ;;  %s690_s2 = inlined_call_operand.vmem [shape: f32[21,192], index: 2, kind: input, shape index: {}]   ;;  %s691_s3 = inlined_call_operand.vmem [shape: f32[64,192], index: 3, kind: output, shape index: {}]  }
   0x1   :  { %76 = vmatprep.subr.mxu0 %v453_v0  ;;  %v45_v1 = vld [vmem:[%s688_s1 + $0x78] sm:$0xff]  ;;  %v44_v2 = vld [vmem:[%s688_s1 + $0x70] sm:$0xff]  ;;  %347 = vmatprep.mubr.f32.mxu1 %v453_v0  ;;  %v43_v3 = vld [vmem:[%s688_s1 + $0x68] sm:$0xff]  ;;  %vm251_vm3 = vcmask 171008   ;;  %vm397_vm4 = vcmask 523264  }
   0x2   :  { %77 = vmatpush1.msra.mxu0 %v45_v1  ;;  %v42_v4 = vld [vmem:[%s688_s1 + $0x60] sm:$0xff]  ;;  %v15_v5 = vld [vmem:[%s689_s0 + $0x8] sm:$0xff]  ;;  %v41_v6 = vld [vmem:[%s688_s1 + $0x58] sm:$0xff] }
   0x3   :  { %78 = vmatprep.subr.mxu0 %v453_v0  ;;  %418 = vmatprep.mubr.msk.f32.mxu0 %vm47_vm0, %v15_v5  ;;  %v40_v7 = vld [vmem:[%s688_s1 + $0x50] sm:$0xff]  ;;  %v39_v8 = vld [vmem:[%s688_s1 + $0x48] sm:$0xff]  ;;  %v38_v9 = vld [vmem:[%s688_s1 + $0x40] sm:$0xff] }
   0x4   :  { %79 = vmatpush1.msra.mxu0 %v44_v2  ;;  %v37_v10 = vld [vmem:[%s688_s1 + $0x38] sm:$0xff]  ;;  %v36_v11 = vld [vmem:[%s688_s1 + $0x30] sm:$0xff]  ;;  %v35_v12 = vld [vmem:[%s688_s1 + $0x28] sm:$0xff] }
   0x5   :  { %80 = vmatprep.subr.mxu0 %v453_v0  ;;  %v34_v13 = vld [vmem:[%s688_s1 + $0x20] sm:$0xff]  ;;  %v33_v14 = vld [vmem:[%s688_s1 + $0x18] sm:$0xff]  ;;  %v32_v15 = vld [vmem:[%s688_s1 + $0x10] sm:$0xff] }
   0x6   :  { %81 = vmatpush1.msra.mxu0 %v43_v3  ;;  %v31_v16 = vld [vmem:[%s688_s1 + $0x8] sm:$0xff]  ;;  %v30_v17 = vld [vmem:[%s688_s1] sm:$0xff]  ;;  %v17_v20 = vld [vmem:[%s689_s0 + $0x18] sm:$0xff] }
   0x7   :  { %82 = vmatprep.subr.mxu0 %v453_v0  ;;  %v46_v18 = vld [vmem:[%s688_s1 + $0x80] sm:$0x1]  ;;  %v16_v21 = vld [vmem:[%s689_s0 + $0x10] sm:$0xff]  ;;  %v19_v22 = vld [vmem:[%s689_s0 + $0x28] sm:$0xff] }
   0x8   :  { %83 = vmatpush1.msra.mxu0 %v42_v4  ;;  %v14_v19 = vld [vmem:[%s689_s0] sm:$0xff]  ;;  %v21_v24 = vld [vmem:[%s689_s0 + $0x38] sm:$0xff]  ;;  %v20_v25 = vld [vmem:[%s689_s0 + $0x30] sm:$0xff] }
   0x9   :  { %84 = vmatprep.subr.mxu0 %v453_v0  ;;  %v18_v23 = vld [vmem:[%s689_s0 + $0x20] sm:$0xff]  ;;  %v23_v26 = vld [vmem:[%s689_s0 + $0x48] sm:$0xff]  ;;  %v25_v28 = vld [vmem:[%s689_s0 + $0x58] sm:$0xff] }
   0xa   :  { %85 = vmatpush1.msra.mxu0 %v41_v6  ;;  %v22_v27 = vld [vmem:[%s689_s0 + $0x40] sm:$0xff]  ;;  %v24_v29 = vld [vmem:[%s689_s0 + $0x50] sm:$0xff]  ;;  %v27_v30 = vld [vmem:[%s689_s0 + $0x68] sm:$0xff] }
   0xb   :  { %86 = vmatprep.subr.mxu0 %v453_v0  ;;  %v26_v31 = vld [vmem:[%s689_s0 + $0x60] sm:$0xff]  ;;  %v29_v32 = vld [vmem:[%s689_s0 + $0x78] sm:$0xff]  ;;  %v28_v33 = vld [vmem:[%s689_s0 + $0x70] sm:$0xff] }
   0xc   :  { %87 = vmatpush1.msra.mxu0 %v40_v7  ;;  %v250_v34 = vld [vmem:[%s690_s2 + $0x28] sm:$0x1f]  ;;  %v249_v35 = vld [vmem:[%s690_s2 + $0x20] sm:$0x1f]  ;;  %v248_v36 = vld [vmem:[%s690_s2 + $0x18] sm:$0xff] }
   0xd   :  { %88 = vmatprep.subr.mxu0 %v453_v0  ;;  %426 = vmatprep.subr.msk.mxu1 %vm276_vm2, %v250_v34  ;;  %v247_v37 = vld [vmem:[%s690_s2 + $0x10] sm:$0xff]  ;;  %v246_v38 = vld [vmem:[%s690_s2 + $0x8] sm:$0xff]  ;;  %v245_v39 = vld [vmem:[%s690_s2] sm:$0xff] }
   0xe   :  { %89 = vmatpush1.msra.mxu0 %v39_v8  ;;  %427 = vmatpush1.msk.msra.mxu1 %vm276_vm2, %v249_v35 }
   0xf   :  { %90 = vmatprep.subr.mxu0 %v453_v0  ;;  %311 = vmatprep.subr.mxu1 %v248_v36 }
  0x10   :  { %91 = vmatpush1.msra.mxu0 %v38_v9  ;;  %312 = vmatpush1.msra.mxu1 %v247_v37 }
  0x11   :  { %92 = vmatprep.subr.mxu0 %v453_v0  ;;  %313 = vmatprep.subr.mxu1 %v246_v38 }
  0x12   :  { %93 = vmatpush1.msra.mxu0 %v37_v10  ;;  %314 = vmatpush1.msra.mxu1 %v245_v39 }
  0x13   :  { %94 = vmatprep.subr.mxu0 %v453_v0 }
  0x14   :  { %95 = vmatpush1.msra.mxu0 %v36_v11 }
  0x15   :  { %96 = vmatprep.subr.mxu0 %v453_v0 }
  0x16   :  { %97 = vmatpush1.msra.mxu0 %v35_v12 }
  0x17   :  { %98 = vmatprep.subr.mxu0 %v453_v0 }
  0x18   :  { %99 = vmatpush1.msra.mxu0 %v34_v13 }
  0x19   :  { %100 = vmatprep.subr.mxu0 %v453_v0 }
  0x1a   :  { %101 = vmatpush1.msra.mxu0 %v33_v14 }
  0x1b   :  { %102 = vmatprep.subr.mxu0 %v453_v0 }
  0x1c   :  { %103 = vmatpush1.msra.mxu0 %v32_v15 }
  0x1d   :  { %104 = vmatprep.subr.mxu0 %v453_v0 }
  0x1e   :  { %105 = vmatpush1.msra.mxu0 %v31_v16 }
  0x1f   :  { %106 = vmatprep.subr.mxu0 %v453_v0 }
  0x20   :  { %107 = vmatpush1.msra.mxu0 %v30_v17 }
  0x21   :  { %138 = vmatprep.subr.mxu0 %v453_v0 }
  0x22   :  { %417 = vmatpush2.msk.msra.mxu0 %vm72_vm1, %v46_v18 }
  0x23   :  { %141 = vmatmul.mubr.f32.vlgmr.msra.gmra.mxu0 %v14_v19 }
  0x24   :  { %419 = vmatprep.mubr.msk.f32.mxu0 %vm47_vm0, %v17_v20 }
  0x27   :  { %146 = vmatmul.mubr.f32.gmra.mxu0 %v16_v21 }
  0x28   :  { %420 = vmatprep.mubr.msk.f32.mxu0 %vm47_vm0, %v19_v22 }
  0x2b   :  { %151 = vmatmul.mubr.f32.gmra.mxu0 %v18_v23 }
  0x2c   :  { %421 = vmatprep.mubr.msk.f32.mxu0 %vm47_vm0, %v21_v24 }
  0x2f   :  { %156 = vmatmul.mubr.f32.gmra.mxu0 %v20_v25 }
  0x30   :  { %422 = vmatprep.mubr.msk.f32.mxu0 %vm47_vm0, %v23_v26 }
  0x33   :  { %161 = vmatmul.mubr.f32.gmra.mxu0 %v22_v27 }
  0x34   :  { %423 = vmatprep.mubr.msk.f32.mxu0 %vm47_vm0, %v25_v28 }
  0x37   :  { %166 = vmatmul.mubr.f32.gmra.mxu0 %v24_v29 }
  0x38   :  { %424 = vmatprep.mubr.msk.f32.mxu0 %vm47_vm0, %v27_v30 }
  0x3b   :  { %171 = vmatmul.mubr.f32.gmra.mxu0 %v26_v31 }
  0x3c   :  { %425 = vmatprep.mubr.msk.f32.mxu0 %vm47_vm0, %v29_v32 }
  0x3f   :  { %176 = vmatmul.mubr.f32.gmra.mxu0 %v28_v33 }
  0xe3   :  { %v142_v40 = vpop.f32.mrf.mxu0 }
  0xe4   :  { %v181_v41 = vmul.f32 %v142_v40, %v142_v40  ;;  %v213_v10 = vmul.f32 0.5, %v142_v40 }
  0xe5   :  { %v144_v42 = vpop.f32.mrf.mxu0 }
  0xe6   :  { %v189_v43 = vmul.f32 0.035677407, %v181_v41 }
  0xe7   :  { %v147_v44 = vpop.f32.mrf.mxu0 }
  0xe8   :  { %v197_v45 = vadd.f32 0.7978846, %v189_v43  ;;  %v182_v46 = vmul.f32 %v147_v44, %v147_v44  ;;  %v214_v20 = vmul.f32 0.5, %v147_v44 }
  0xe9   :  { %v149_v47 = vpop.f32.mrf.mxu0 }
  0xea   :  { %v205_v48 = vmul.f32 %v197_v45, %v142_v40  ;;  %v190_v49 = vmul.f32 0.035677407, %v182_v46 }
  0xeb   :  { %v152_v50 = vpop.f32.mrf.mxu0 }
  0xec   :  { %437 = vtanh.f32 %v205_v48  ;;  %v198_v51 = vadd.f32 0.7978846, %v190_v49  ;;  %v183_v52 = vmul.f32 %v152_v50, %v152_v50  ;;  %v215_v30 = vmul.f32 0.5, %v152_v50 }
  0xed   :  { %v154_v53 = vpop.f32.mrf.mxu0 }
  0xee   :  { %v206_v54 = vmul.f32 %v198_v51, %v147_v44  ;;  %v191_v55 = vmul.f32 0.035677407, %v183_v52 }
  0xef   :  { %v157_v56 = vpop.f32.mrf.mxu0 }
  0xf0   :  { %439 = vtanh.f32 %v206_v54  ;;  %v199_v57 = vadd.f32 0.7978846, %v191_v55  ;;  %v184_v58 = vmul.f32 %v157_v56, %v157_v56  ;;  %v216_v37 = vmul.f32 0.5, %v157_v56 }
  0xf1   :  { %v159_v59 = vpop.f32.mrf.mxu0 }
  0xf2   :  { %v207_v60 = vmul.f32 %v199_v57, %v152_v50  ;;  %v192_v61 = vmul.f32 0.035677407, %v184_v58 }
  0xf3   :  { %v162_v62 = vpop.f32.mrf.mxu0 }
  0xf4   :  { %441 = vtanh.f32 %v207_v60  ;;  %v200_v63 = vadd.f32 0.7978846, %v192_v61  ;;  %v185_v1 = vmul.f32 %v162_v62, %v162_v62  ;;  %v217_v42 = vmul.f32 0.5, %v162_v62 }
  0xf5   :  { %v164_v2 = vpop.f32.mrf.mxu0 }
  0xf6   :  { %v208_v3 = vmul.f32 %v200_v63, %v157_v56  ;;  %v193_v4 = vmul.f32 0.035677407, %v185_v1 }
  0xf7   :  { %v167_v5 = vpop.f32.mrf.mxu0 }
  0xf8   :  { %443 = vtanh.f32 %v208_v3  ;;  %v201_v6 = vadd.f32 0.7978846, %v193_v4  ;;  %v186_v7 = vmul.f32 %v167_v5, %v167_v5  ;;  %v218_v46 = vmul.f32 0.5, %v167_v5 }
  0xf9   :  { %v438_v8 = vpop.eup %437  ;;  %v169_v9 = vpop.f32.mrf.mxu0 }
  0xfa   :  { %v229_v11 = vadd.f32 1.0, %v438_v8  ;;  %v209_v12 = vmul.f32 %v201_v6, %v162_v62  ;;  %v194_v13 = vmul.f32 0.035677407, %v186_v7 }
  0xfb   :  { %v172_v14 = vpop.f32.mrf.mxu0 }
  0xfc   :  { %v237_v15 = vmul.f32 %v229_v11, %v213_v10  ;;  %445 = vtanh.f32 %v209_v12  ;;  %v202_v16 = vadd.f32 0.7978846, %v194_v13  ;;  %v187_v17 = vmul.f32 %v172_v14, %v172_v14 }
  0xfd   :  { %v440_v18 = vpop.eup %439  ;;  %v174_v19 = vpop.f32.mrf.mxu0  ;;  %v219_v50 = vmul.f32 0.5, %v172_v14 }
  0xfe   :  { %v230_v21 = vadd.f32 1.0, %v440_v18  ;;  %v210_v22 = vmul.f32 %v202_v16, %v167_v5  ;;  %v195_v23 = vmul.f32 0.035677407, %v187_v17  ;;  %428 = vmatmul.mubr.msk.f32.vlgmr.msra.gmra.mxu1 %vm251_vm3, %v237_v15 }
  0xff   :  { %v177_v24 = vpop.f32.mrf.mxu0  ;;  %353 = vmatprep.mubr.f32.mxu1 %v453_v0 }
 0x100   :  { %v238_v25 = vmul.f32 %v230_v21, %v214_v20  ;;  %447 = vtanh.f32 %v210_v22  ;;  %v203_v26 = vadd.f32 0.7978846, %v195_v23  ;;  %v188_v27 = vmul.f32 %v177_v24, %v177_v24 }
 0x101   :  { %v442_v28 = vpop.eup %441  ;;  %v179_v29 = vpop.f32.mrf.mxu0  ;;  %v220_v54 = vmul.f32 0.5, %v177_v24 }
 0x102   :  { %v231_v31 = vadd.f32 1.0, %v442_v28  ;;  %v211_v32 = vmul.f32 %v203_v26, %v172_v14  ;;  %v196_v33 = vmul.f32 0.035677407, %v188_v27  ;;  %429 = vmatmul.mubr.msk.f32.gmra.mxu1 %vm251_vm3, %v238_v25 }
 0x103   :  { %359 = vmatprep.mubr.f32.mxu1 %v453_v0 }
 0x104   :  { %v239_v34 = vmul.f32 %v231_v31, %v215_v30  ;;  %449 = vtanh.f32 %v211_v32  ;;  %v204_v35 = vadd.f32 0.7978846, %v196_v33 }
 0x105   :  { %v444_v36 = vpop.eup %443 }
 0x106   :  { %v232_v38 = vadd.f32 1.0, %v444_v36  ;;  %v212_v39 = vmul.f32 %v204_v35, %v177_v24  ;;  %430 = vmatmul.mubr.msk.f32.gmra.mxu1 %vm251_vm3, %v239_v34 }
 0x107   :  { %365 = vmatprep.mubr.f32.mxu1 %v453_v0 }
 0x108   :  { %v240_v40 = vmul.f32 %v232_v38, %v216_v37  ;;  %451 = vtanh.f32 %v212_v39 }
 0x109   :  { %v446_v41 = vpop.eup %445 }
 0x10a   :  { %v233_v43 = vadd.f32 1.0, %v446_v41  ;;  %431 = vmatmul.mubr.msk.f32.gmra.mxu1 %vm251_vm3, %v240_v40 }
 0x10b   :  { %371 = vmatprep.mubr.f32.mxu1 %v453_v0 }
 0x10c   :  { %v241_v44 = vmul.f32 %v233_v43, %v217_v42 }
 0x10d   :  { %v448_v45 = vpop.eup %447 }
 0x10e   :  { %v234_v47 = vadd.f32 1.0, %v448_v45  ;;  %432 = vmatmul.mubr.msk.f32.gmra.mxu1 %vm251_vm3, %v241_v44 }
 0x10f   :  { %377 = vmatprep.mubr.f32.mxu1 %v453_v0 }
 0x110   :  { %v242_v48 = vmul.f32 %v234_v47, %v218_v46 }
 0x111   :  { %v450_v49 = vpop.eup %449 }
 0x112   :  { %v235_v51 = vadd.f32 1.0, %v450_v49  ;;  %433 = vmatmul.mubr.msk.f32.gmra.mxu1 %vm251_vm3, %v242_v48 }
 0x113   :  { %383 = vmatprep.mubr.f32.mxu1 %v453_v0 }
 0x114   :  { %v243_v52 = vmul.f32 %v235_v51, %v219_v50 }
 0x115   :  { %v452_v53 = vpop.eup %451 }
 0x116   :  { %v236_v55 = vadd.f32 1.0, %v452_v53  ;;  %434 = vmatmul.mubr.msk.f32.gmra.mxu1 %vm251_vm3, %v243_v52 }
 0x117   :  { %389 = vmatprep.mubr.f32.mxu1 %v453_v0 }
 0x118   :  { %v244_v56 = vmul.f32 %v236_v55, %v220_v54 }
 0x11a   :  { %435 = vmatmul.mubr.msk.f32.gmra.mxu1 %vm251_vm3, %v244_v56 }
 0x1be   :  { %v349_v57 = vpop.f32.mrf.mxu1 }
 0x1bf   :  { %396 = vst [vmem:[%s691_s3] sm:$0xff] %v349_v57 }
 0x1c0   :  { %v351_v58 = vpop.f32.mrf.mxu1 }
 0x1c1   :  { %398 = vst.msk [vmem:[%s691_s3 + $0x8] sm:$0xff] %vm397_vm4, %v351_v58 }
 0x1c2   :  { %v355_v59 = vpop.f32.mrf.mxu1 }
 0x1c3   :  { %399 = vst [vmem:[%s691_s3 + $0x10] sm:$0xff] %v355_v59 }
 0x1c4   :  { %v357_v0 = vpop.f32.mrf.mxu1 }
 0x1c5   :  { %400 = vst.msk [vmem:[%s691_s3 + $0x18] sm:$0xff] %vm397_vm4, %v357_v0 }
 0x1c6   :  { %v361_v60 = vpop.f32.mrf.mxu1 }
 0x1c7   :  { %401 = vst [vmem:[%s691_s3 + $0x20] sm:$0xff] %v361_v60 }
 0x1c8   :  { %v363_v61 = vpop.f32.mrf.mxu1 }
 0x1c9   :  { %402 = vst.msk [vmem:[%s691_s3 + $0x28] sm:$0xff] %vm397_vm4, %v363_v61 }
 0x1ca   :  { %v367_v62 = vpop.f32.mrf.mxu1 }
 0x1cb   :  { %403 = vst [vmem:[%s691_s3 + $0x30] sm:$0xff] %v367_v62 }
 0x1cc   :  { %v369_v63 = vpop.f32.mrf.mxu1 }
 0x1cd   :  { %404 = vst.msk [vmem:[%s691_s3 + $0x38] sm:$0xff] %vm397_vm4, %v369_v63 }
 0x1ce   :  { %v373_v1 = vpop.f32.mrf.mxu1 }
 0x1cf   :  { %405 = vst [vmem:[%s691_s3 + $0x40] sm:$0xff] %v373_v1 }
 0x1d0   :  { %v375_v2 = vpop.f32.mrf.mxu1 }
 0x1d1   :  { %406 = vst.msk [vmem:[%s691_s3 + $0x48] sm:$0xff] %vm397_vm4, %v375_v2 }
 0x1d2   :  { %v379_v3 = vpop.f32.mrf.mxu1 }
 0x1d3   :  { %407 = vst [vmem:[%s691_s3 + $0x50] sm:$0xff] %v379_v3 }
 0x1d4   :  { %v381_v4 = vpop.f32.mrf.mxu1 }
 0x1d5   :  { %408 = vst.msk [vmem:[%s691_s3 + $0x58] sm:$0xff] %vm397_vm4, %v381_v4 }
 0x1d6   :  { %v385_v5 = vpop.f32.mrf.mxu1 }
 0x1d7   :  { %409 = vst [vmem:[%s691_s3 + $0x60] sm:$0xff] %v385_v5 }
 0x1d8   :  { %v387_v6 = vpop.f32.mrf.mxu1 }
 0x1d9   :  { %410 = vst.msk [vmem:[%s691_s3 + $0x68] sm:$0xff] %vm397_vm4, %v387_v6 }
 0x1da   :  { %v391_v7 = vpop.f32.mrf.mxu1 }
 0x1db   :  { %411 = vst [vmem:[%s691_s3 + $0x70] sm:$0xff] %v391_v7 }
 0x1dc   :  { %v393_v8 = vpop.f32.mrf.mxu1 }
 0x1dd   :  { %412 = vst.msk [vmem:[%s691_s3 + $0x78] sm:$0xff] %vm397_vm4, %v393_v8 }

</bundles_post_ra>
